<compile_context>
chip_gen: v7x
topology: tpu7x:2x2x1
jax: 0.10.0
libtpu: 0.0.40
codegen_flags: <defaults>
</compile_context>

<pallas_src>
import functools

import jax
import jax.numpy as jnp
from jax import lax
from jax.experimental import pallas as pl
from jax.experimental.pallas import tpu as pltpu


# ---------------------------------------------------------------------------
# Pallas kernel: fused 4x4 conv (tap accumulation) + activation (+ sigmoid)
# ---------------------------------------------------------------------------
def _conv4x4_kernel(x_ref, w_ref, *out_refs, stride, tho, wo, act, with_sigmoid):
    """One grid step = (batch image, block of output rows, Cout tile).

    x_ref : (1, Hp, s, Wp//s, Cin)  zero-padded input, W split into s phases (bf16)
    w_ref : (16, Cin, tc)           weights, tap-major (kh*4+kw)             (bf16)
    out_refs[0] : (1, tho, Wo, tc)  conv output                               (f32)
    out_refs[1] : (1, tho, Wo, tc)  sigmoid(conv) output (only if with_sigmoid, f32)
    """
    o_ref = out_refs[0]
    tc = o_ref.shape[-1]
    hb = pl.program_id(1)

    def row_body(r, carry):
        ho = hb * tho + r
        acc = jnp.zeros((wo, tc), jnp.float32)
        for kh in range(4):                         # static tap loops
            row = ho * stride + kh                  # dynamic input row
            for kw in range(4):
                phase = kw % stride                 # static
                off = kw // stride                  # static
                patch = x_ref[:, pl.ds(row, 1), pl.ds(phase, 1),
                              pl.ds(off, wo), :][0, 0, 0]          # (Wo, Cin) bf16
                w_tap = w_ref[kh * 4 + kw]                         # (Cin, tc) bf16
                acc = acc + jnp.dot(patch, w_tap,
                                    preferred_element_type=jnp.float32)
        y = acc
        if act == "leaky":
            y = jnp.where(y >= 0.0, y, 0.2 * y)     # LeakyReLU(0.2) in f32
        o_ref[:, pl.ds(r, 1), :, :] = y[None, None].astype(o_ref.dtype)
        if with_sigmoid:
            s_ref = out_refs[1]
            s_ref[:, pl.ds(r, 1), :, :] = (
                jax.nn.sigmoid(y)[None, None].astype(s_ref.dtype))
        return carry

    lax.fori_loop(0, tho, row_body, 0)


def conv4x4(x_nhwc, w_taps, stride, act, with_sigmoid=False):
    """Fused spectral-norm conv layer.  x_nhwc: (N,H,W,Cin) f32,
    w_taps: (16, Cin, CoutP) bf16.  Returns f32 NHWC output(s)."""
    n, h, w, cin = x_nhwc.shape
    coutp = w_taps.shape[-1]

    xp = jnp.pad(x_nhwc, ((0, 0), (1, 1), (1, 1), (0, 0))).astype(jnp.bfloat16)
    hp, wp = h + 2, w + 2
    assert wp % stride == 0
    ho = (hp - 4) // stride + 1
    wo = (wp - 4) // stride + 1
    # Split W into `stride` phases so every in-kernel tap slice is contiguous.
    xs = xp.reshape(n, hp, wp // stride, stride, cin).transpose(0, 1, 3, 2, 4)
    wps = wp // stride

    tc = min(coutp, 128)                                  # lane-dense Cout tile
    tho = max(d for d in range(1, min(ho, 8) + 1) if ho % d == 0)
    grid = (n, ho // tho, coutp // tc)

    out_shape = jax.ShapeDtypeStruct((n, ho, wo, coutp), jnp.float32)
    out_spec = pl.BlockSpec((1, tho, wo, tc), lambda b, i, j: (b, i, 0, j))
    n_out = 2 if with_sigmoid else 1

    kernel = functools.partial(_conv4x4_kernel, stride=stride, tho=tho, wo=wo,
                               act=act, with_sigmoid=with_sigmoid)
    return pl.pallas_call(
        kernel,
        out_shape=tuple([out_shape] * n_out) if with_sigmoid else out_shape,
        grid_spec=pltpu.PrefetchScalarGridSpec(
            num_scalar_prefetch=0,
            grid=grid,
            in_specs=[
                # whole padded image (resident across row/cout blocks)
                pl.BlockSpec((1, hp, stride, wps, cin),
                             lambda b, i, j: (b, 0, 0, 0, 0)),
                # weight taps for this Cout tile
                pl.BlockSpec((16, cin, tc), lambda b, i, j: (0, 0, j)),
            ],
            out_specs=tuple([out_spec] * n_out) if with_sigmoid else out_spec,
        ),
        compiler_params=pltpu.CompilerParams(
            dimension_semantics=("parallel", "parallel", "parallel"),
        ),
    )(xs, w_taps)


# ---------------------------------------------------------------------------
# Plain-JAX glue: spectral norm, weight packing, parameter setup
# ---------------------------------------------------------------------------
def spectral_normalize(w, u, eps=1e-12):
    """PyTorch nn.utils.spectral_norm (eval semantics): one power iteration,
    w / sigma.  w: (Cout, Cin, KH, KW), u: (Cout,)."""
    # TODO(synk): training-mode spectral_norm updates the `u` buffer in place;
    # here `u` stays fixed (eval-mode behavior).
    cout = w.shape[0]
    w_mat = w.reshape(cout, -1)
    v = w_mat.T @ u
    v = v / (jnp.linalg.norm(v) + eps)
    u_new = w_mat @ v
    u_new = u_new / (jnp.linalg.norm(u_new) + eps)
    sigma = u_new @ (w_mat @ v)
    return w / sigma


def prep_weight(w, u):
    """-> (w_taps bf16 of shape (16, Cin, CoutP), true Cout)."""
    cout, cin = w.shape[0], w.shape[1]
    w_sn = spectral_normalize(w, u)
    w_taps = jnp.transpose(w_sn, (2, 3, 1, 0)).reshape(16, cin, cout)
    coutp = cout if cout >= 64 else 128   # lane-pad tiny Cout (conv5: 1 -> 128)
    if coutp != cout:
        w_taps = jnp.pad(w_taps, ((0, 0), (0, 0), (0, coutp - cout)))
    return w_taps.astype(jnp.bfloat16), cout


def init_params(key, in_channels):
    """Deterministic synthetic weights, PyTorch layout (Cout, Cin, KH, KW)."""
    chans = [in_channels, 64, 128, 256, 512, 1]
    params = []
    for i in range(5):
        key, kw_key, ku_key = jax.random.split(key, 3)
        cout, cin = chans[i + 1], chans[i]
        fan_in = cin * 16
        w = jax.random.normal(kw_key, (cout, cin, 4, 4), jnp.float32) / jnp.sqrt(
            float(fan_in))
        u = jax.random.normal(ku_key, (cout,), jnp.float32)
        u = u / (jnp.linalg.norm(u) + 1e-12)
        params.append((w, u))
    return params


# ---------------------------------------------------------------------------
# D_Net forward (mirrors the PyTorch module)
# ---------------------------------------------------------------------------
def d_net_forward(x_nchw, params, use_sigmoid=True):
    """Returns (outputs, [conv1..conv5]) in NCHW, like D_Net.forward."""
    h = jnp.transpose(x_nchw, (0, 2, 3, 1))       # NCHW -> NHWC once, up front
    strides = (2, 2, 2, 1, 1)
    feats = []
    outputs = None
    n_layers = len(params)
    for i, (w, u) in enumerate(params):
        w_taps, cout = prep_weight(w, u)
        is_last = i == n_layers - 1
        act = "leaky" if not is_last else "none"  # conv1..4 have LeakyReLU(0.2)
        if is_last and use_sigmoid:
            conv, sig = conv4x4(h, w_taps, strides[i], act, with_sigmoid=True)
            conv, sig = conv[..., :cout], sig[..., :cout]
            feats.append(conv)
            outputs = sig
        else:
            y = conv4x4(h, w_taps, strides[i], act)[..., :cout]
            feats.append(y)
            h = y
    if outputs is None:
        outputs = feats[-1]
    to_nchw = lambda t: jnp.transpose(t, (0, 3, 1, 2))   # only at the very end
    return to_nchw(outputs), [to_nchw(f) for f in feats]


# ---------------------------------------------------------------------------
if __name__ == "__main__":
    key = jax.random.PRNGKey(0)
    kx, kp = jax.random.split(key)

    # H=W=32 keeps the 5-conv stack valid: 32 -> 16 -> 8 -> 4 -> 3 -> 2.
    batch, in_channels, H, W = 2, 4, 32, 32
    x = jax.random.normal(kx, (batch, in_channels, H, W), jnp.float32)
    params = init_params(kp, in_channels)

    outputs, feats = d_net_forward(x, params, use_sigmoid=True)
    outputs = jax.block_until_ready(outputs)
    feats = [jax.block_until_ready(f) for f in feats]

    assert outputs.shape == (2, 1, 2, 2), outputs.shape
    expected = [(2, 64, 16, 16), (2, 128, 8, 8), (2, 256, 4, 4),
                (2, 512, 3, 3), (2, 1, 2, 2)]
    assert [f.shape for f in feats] == expected, [f.shape for f in feats]
    assert bool(jnp.all((outputs >= 0.0) & (outputs <= 1.0)))

    # Numerical self-check vs an XLA conv reference using the same bf16
    # operands and f32 accumulation (layer-by-layer, chained from the Pallas
    # features, so only accumulation-order noise remains).
    strides = (2, 2, 2, 1, 1)
    h_ref = x
    for i, (w, u) in enumerate(params):
        w_sn = spectral_normalize(w, u).astype(jnp.bfloat16)
        dn = jax.lax.conv_dimension_numbers(h_ref.shape, w_sn.shape,
                                            ("NCHW", "OIHW", "NCHW"))
        y_ref = jax.lax.conv_general_dilated(
            h_ref.astype(jnp.bfloat16), w_sn,
            window_strides=(strides[i], strides[i]), padding=[(1, 1), (1, 1)],
            dimension_numbers=dn, preferred_element_type=jnp.float32)
        if i < 4:
            y_ref = jnp.where(y_ref >= 0.0, y_ref, 0.2 * y_ref)
        err = float(jnp.max(jnp.abs(y_ref - feats[i])))
        assert err < 0.1, (i, err)
        h_ref = feats[i]
    sig_err = float(jnp.max(jnp.abs(jax.nn.sigmoid(feats[-1]) - outputs)))
    assert sig_err < 1e-2, sig_err

    print("KERNEL_OK")
</pallas_src>

<mosaic_0001>
module attributes {stable_mosaic.version = 11 : i64} {
  func.func @_conv4x4_kernel(%arg0: i32, %arg1: i32, %arg2: i32, %arg3: memref<1x34x2x17x4xbf16, #tpu.memory_space<vmem>>, %arg4: memref<16x4x64xbf16, #tpu.memory_space<vmem>>, %arg5: memref<1x8x16x64xf32, #tpu.memory_space<vmem>>) attributes {dimension_semantics = [#tpu.dimension_semantics<parallel>, #tpu.dimension_semantics<parallel>, #tpu.dimension_semantics<parallel>], iteration_bounds = array<i64: 2, 2, 1>, scalar_prefetch = 0 : i64, scratch_operands = 0 : i64, tpu.core_type = #tpu.core_type<tc>, window_params = [{transform_indices = @transform_0, window_bounds = array<i64: 1, 34, 2, 17, 4>}, {transform_indices = @transform_1, window_bounds = array<i64: 16, 4, 64>}, {transform_indices = @transform_2, window_bounds = array<i64: 1, 8, 16, 64>}]} {
    %c0_i32 = arith.constant 0 : i32
    %c8_i32 = arith.constant 8 : i32
    %0 = arith.addi %c0_i32, %c8_i32 : i32
    %c1_i32 = arith.constant 1 : i32
    scf.for %arg6 = %c0_i32 to %0 step %c1_i32  : i32 {
      %c8_i32_1 = arith.constant 8 : i32
      %1 = arith.muli %arg1, %c8_i32_1 : i32
      %2 = arith.addi %1, %arg6 : i32
      %cst = arith.constant 0.000000e+00 : f32
      %3 = vector.broadcast %cst : f32 to vector<16x64xf32>
      %c2_i32 = arith.constant 2 : i32
      %4 = arith.muli %2, %c2_i32 : i32
      %c0_i32_2 = arith.constant 0 : i32
      %5 = arith.addi %4, %c0_i32_2 : i32
      %c0 = arith.constant 0 : index
      %6 = arith.index_cast %5 : i32 to index
      %c0_3 = arith.constant 0 : index
      %c0_4 = arith.constant 0 : index
      %c0_5 = arith.constant 0 : index
      %7 = vector.load %arg3[%c0, %6, %c0_3, %c0_4, %c0_5] : memref<1x34x2x17x4xbf16, #tpu.memory_space<vmem>>, vector<1x1x1x16x4xbf16>
      %8 = vector.shape_cast %7 : vector<1x1x1x16x4xbf16> to vector<16x4xbf16>
      %c0_6 = arith.constant 0 : index
      %c0_7 = arith.constant 0 : index
      %c0_8 = arith.constant 0 : index
      %9 = vector.load %arg4[%c0_6, %c0_7, %c0_8] : memref<16x4x64xbf16, #tpu.memory_space<vmem>>, vector<1x4x64xbf16>
      %10 = vector.shape_cast %9 : vector<1x4x64xbf16> to vector<4x64xbf16>
      %cst_9 = arith.constant dense<0.000000e+00> : vector<16x64xf32>
      %11 = tpu.matmul %8, %10, %cst_9 {dimension_numbers = #tpu.dot_dimension_numbers<[1], [0], [0], [1], [0, 0, 1, 1], [], []>} : vector<16x4xbf16>, vector<4x64xbf16>, vector<16x64xf32> -> vector<16x64xf32>
      %12 = arith.addf %3, %11 : vector<16x64xf32>
      %c0_10 = arith.constant 0 : index
      %13 = arith.index_cast %5 : i32 to index
      %c1 = arith.constant 1 : index
      %c0_11 = arith.constant 0 : index
      %c0_12 = arith.constant 0 : index
      %14 = vector.load %arg3[%c0_10, %13, %c1, %c0_11, %c0_12] : memref<1x34x2x17x4xbf16, #tpu.memory_space<vmem>>, vector<1x1x1x16x4xbf16>
      %15 = vector.shape_cast %14 : vector<1x1x1x16x4xbf16> to vector<16x4xbf16>
      %c1_13 = arith.constant 1 : index
      %c0_14 = arith.constant 0 : index
      %c0_15 = arith.constant 0 : index
      %16 = vector.load %arg4[%c1_13, %c0_14, %c0_15] : memref<16x4x64xbf16, #tpu.memory_space<vmem>>, vector<1x4x64xbf16>
      %17 = vector.shape_cast %16 : vector<1x4x64xbf16> to vector<4x64xbf16>
      %cst_16 = arith.constant dense<0.000000e+00> : vector<16x64xf32>
      %18 = tpu.matmul %15, %17, %cst_16 {dimension_numbers = #tpu.dot_dimension_numbers<[1], [0], [0], [1], [0, 0, 1, 1], [], []>} : vector<16x4xbf16>, vector<4x64xbf16>, vector<16x64xf32> -> vector<16x64xf32>
      %19 = arith.addf %12, %18 : vector<16x64xf32>
      %c0_17 = arith.constant 0 : index
      %20 = arith.index_cast %5 : i32 to index
      %c0_18 = arith.constant 0 : index
      %c1_19 = arith.constant 1 : index
      %c0_20 = arith.constant 0 : index
      %21 = vector.load %arg3[%c0_17, %20, %c0_18, %c1_19, %c0_20] : memref<1x34x2x17x4xbf16, #tpu.memory_space<vmem>>, vector<1x1x1x16x4xbf16>
      %22 = vector.shape_cast %21 : vector<1x1x1x16x4xbf16> to vector<16x4xbf16>
      %c2 = arith.constant 2 : index
      %c0_21 = arith.constant 0 : index
      %c0_22 = arith.constant 0 : index
      %23 = vector.load %arg4[%c2, %c0_21, %c0_22] : memref<16x4x64xbf16, #tpu.memory_space<vmem>>, vector<1x4x64xbf16>
      %24 = vector.shape_cast %23 : vector<1x4x64xbf16> to vector<4x64xbf16>
      %cst_23 = arith.constant dense<0.000000e+00> : vector<16x64xf32>
      %25 = tpu.matmul %22, %24, %cst_23 {dimension_numbers = #tpu.dot_dimension_numbers<[1], [0], [0], [1], [0, 0, 1, 1], [], []>} : vector<16x4xbf16>, vector<4x64xbf16>, vector<16x64xf32> -> vector<16x64xf32>
      %26 = arith.addf %19, %25 : vector<16x64xf32>
      %c0_24 = arith.constant 0 : index
      %27 = arith.index_cast %5 : i32 to index
      %c1_25 = arith.constant 1 : index
      %c1_26 = arith.constant 1 : index
      %c0_27 = arith.constant 0 : index
      %28 = vector.load %arg3[%c0_24, %27, %c1_25, %c1_26, %c0_27] : memref<1x34x2x17x4xbf16, #tpu.memory_space<vmem>>, vector<1x1x1x16x4xbf16>
      %29 = vector.shape_cast %28 : vector<1x1x1x16x4xbf16> to vector<16x4xbf16>
      %c3 = arith.constant 3 : index
      %c0_28 = arith.constant 0 : index
      %c0_29 = arith.constant 0 : index
      %30 = vector.load %arg4[%c3, %c0_28, %c0_29] : memref<16x4x64xbf16, #tpu.memory_space<vmem>>, vector<1x4x64xbf16>
      %31 = vector.shape_cast %30 : vector<1x4x64xbf16> to vector<4x64xbf16>
      %cst_30 = arith.constant dense<0.000000e+00> : vector<16x64xf32>
      %32 = tpu.matmul %29, %31, %cst_30 {dimension_numbers = #tpu.dot_dimension_numbers<[1], [0], [0], [1], [0, 0, 1, 1], [], []>} : vector<16x4xbf16>, vector<4x64xbf16>, vector<16x64xf32> -> vector<16x64xf32>
      %33 = arith.addf %26, %32 : vector<16x64xf32>
      %c2_i32_31 = arith.constant 2 : i32
      %34 = arith.muli %2, %c2_i32_31 : i32
      %c1_i32_32 = arith.constant 1 : i32
      %35 = arith.addi %34, %c1_i32_32 : i32
      %c0_33 = arith.constant 0 : index
      %36 = arith.index_cast %35 : i32 to index
      %c0_34 = arith.constant 0 : index
      %c0_35 = arith.constant 0 : index
      %c0_36 = arith.constant 0 : index
      %37 = vector.load %arg3[%c0_33, %36, %c0_34, %c0_35, %c0_36] : memref<1x34x2x17x4xbf16, #tpu.memory_space<vmem>>, vector<1x1x1x16x4xbf16>
      %38 = vector.shape_cast %37 : vector<1x1x1x16x4xbf16> to vector<16x4xbf16>
      %c4 = arith.constant 4 : index
      %c0_37 = arith.constant 0 : index
      %c0_38 = arith.constant 0 : index
      %39 = vector.load %arg4[%c4, %c0_37, %c0_38] : memref<16x4x64xbf16, #tpu.memory_space<vmem>>, vector<1x4x64xbf16>
      %40 = vector.shape_cast %39 : vector<1x4x64xbf16> to vector<4x64xbf16>
      %cst_39 = arith.constant dense<0.000000e+00> : vector<16x64xf32>
      %41 = tpu.matmul %38, %40, %cst_39 {dimension_numbers = #tpu.dot_dimension_numbers<[1], [0], [0], [1], [0, 0, 1, 1], [], []>} : vector<16x4xbf16>, vector<4x64xbf16>, vector<16x64xf32> -> vector<16x64xf32>
      %42 = arith.addf %33, %41 : vector<16x64xf32>
      %c0_40 = arith.constant 0 : index
      %43 = arith.index_cast %35 : i32 to index
      %c1_41 = arith.constant 1 : index
      %c0_42 = arith.constant 0 : index
      %c0_43 = arith.constant 0 : index
      %44 = vector.load %arg3[%c0_40, %43, %c1_41, %c0_42, %c0_43] : memref<1x34x2x17x4xbf16, #tpu.memory_space<vmem>>, vector<1x1x1x16x4xbf16>
      %45 = vector.shape_cast %44 : vector<1x1x1x16x4xbf16> to vector<16x4xbf16>
      %c5 = arith.constant 5 : index
      %c0_44 = arith.constant 0 : index
      %c0_45 = arith.constant 0 : index
      %46 = vector.load %arg4[%c5, %c0_44, %c0_45] : memref<16x4x64xbf16, #tpu.memory_space<vmem>>, vector<1x4x64xbf16>
      %47 = vector.shape_cast %46 : vector<1x4x64xbf16> to vector<4x64xbf16>
      %cst_46 = arith.constant dense<0.000000e+00> : vector<16x64xf32>
      %48 = tpu.matmul %45, %47, %cst_46 {dimension_numbers = #tpu.dot_dimension_numbers<[1], [0], [0], [1], [0, 0, 1, 1], [], []>} : vector<16x4xbf16>, vector<4x64xbf16>, vector<16x64xf32> -> vector<16x64xf32>
      %49 = arith.addf %42, %48 : vector<16x64xf32>
      %c0_47 = arith.constant 0 : index
      %50 = arith.index_cast %35 : i32 to index
      %c0_48 = arith.constant 0 : index
      %c1_49 = arith.constant 1 : index
      %c0_50 = arith.constant 0 : index
      %51 = vector.load %arg3[%c0_47, %50, %c0_48, %c1_49, %c0_50] : memref<1x34x2x17x4xbf16, #tpu.memory_space<vmem>>, vector<1x1x1x16x4xbf16>
      %52 = vector.shape_cast %51 : vector<1x1x1x16x4xbf16> to vector<16x4xbf16>
      %c6 = arith.constant 6 : index
      %c0_51 = arith.constant 0 : index
      %c0_52 = arith.constant 0 : index
      %53 = vector.load %arg4[%c6, %c0_51, %c0_52] : memref<16x4x64xbf16, #tpu.memory_space<vmem>>, vector<1x4x64xbf16>
      %54 = vector.shape_cast %53 : vector<1x4x64xbf16> to vector<4x64xbf16>
      %cst_53 = arith.constant dense<0.000000e+00> : vector<16x64xf32>
      %55 = tpu.matmul %52, %54, %cst_53 {dimension_numbers = #tpu.dot_dimension_numbers<[1], [0], [0], [1], [0, 0, 1, 1], [], []>} : vector<16x4xbf16>, vector<4x64xbf16>, vector<16x64xf32> -> vector<16x64xf32>
      %56 = arith.addf %49, %55 : vector<16x64xf32>
      %c0_54 = arith.constant 0 : index
      %57 = arith.index_cast %35 : i32 to index
      %c1_55 = arith.constant 1 : index
      %c1_56 = arith.constant 1 : index
      %c0_57 = arith.constant 0 : index
      %58 = vector.load %arg3[%c0_54, %57, %c1_55, %c1_56, %c0_57] : memref<1x34x2x17x4xbf16, #tpu.memory_space<vmem>>, vector<1x1x1x16x4xbf16>
      %59 = vector.shape_cast %58 : vector<1x1x1x16x4xbf16> to vector<16x4xbf16>
      %c7 = arith.constant 7 : index
      %c0_58 = arith.constant 0 : index
      %c0_59 = arith.constant 0 : index
      %60 = vector.load %arg4[%c7, %c0_58, %c0_59] : memref<16x4x64xbf16, #tpu.memory_space<vmem>>, vector<1x4x64xbf16>
      %61 = vector.shape_cast %60 : vector<1x4x64xbf16> to vector<4x64xbf16>
      %cst_60 = arith.constant dense<0.000000e+00> : vector<16x64xf32>
      %62 = tpu.matmul %59, %61, %cst_60 {dimension_numbers = #tpu.dot_dimension_numbers<[1], [0], [0], [1], [0, 0, 1, 1], [], []>} : vector<16x4xbf16>, vector<4x64xbf16>, vector<16x64xf32> -> vector<16x64xf32>
      %63 = arith.addf %56, %62 : vector<16x64xf32>
      %c2_i32_61 = arith.constant 2 : i32
      %64 = arith.muli %2, %c2_i32_61 : i32
      %c2_i32_62 = arith.constant 2 : i32
      %65 = arith.addi %64, %c2_i32_62 : i32
      %c0_63 = arith.constant 0 : index
      %66 = arith.index_cast %65 : i32 to index
      %c0_64 = arith.constant 0 : index
      %c0_65 = arith.constant 0 : index
      %c0_66 = arith.constant 0 : index
      %67 = vector.load %arg3[%c0_63, %66, %c0_64, %c0_65, %c0_66] : memref<1x34x2x17x4xbf16, #tpu.memory_space<vmem>>, vector<1x1x1x16x4xbf16>
      %68 = vector.shape_cast %67 : vector<1x1x1x16x4xbf16> to vector<16x4xbf16>
      %c8 = arith.constant 8 : index
      %c0_67 = arith.constant 0 : index
      %c0_68 = arith.constant 0 : index
      %69 = vector.load %arg4[%c8, %c0_67, %c0_68] : memref<16x4x64xbf16, #tpu.memory_space<vmem>>, vector<1x4x64xbf16>
      %70 = vector.shape_cast %69 : vector<1x4x64xbf16> to vector<4x64xbf16>
      %cst_69 = arith.constant dense<0.000000e+00> : vector<16x64xf32>
      %71 = tpu.matmul %68, %70, %cst_69 {dimension_numbers = #tpu.dot_dimension_numbers<[1], [0], [0], [1], [0, 0, 1, 1], [], []>} : vector<16x4xbf16>, vector<4x64xbf16>, vector<16x64xf32> -> vector<16x64xf32>
      %72 = arith.addf %63, %71 : vector<16x64xf32>
      %c0_70 = arith.constant 0 : index
      %73 = arith.index_cast %65 : i32 to index
      %c1_71 = arith.constant 1 : index
      %c0_72 = arith.constant 0 : index
      %c0_73 = arith.constant 0 : index
      %74 = vector.load %arg3[%c0_70, %73, %c1_71, %c0_72, %c0_73] : memref<1x34x2x17x4xbf16, #tpu.memory_space<vmem>>, vector<1x1x1x16x4xbf16>
      %75 = vector.shape_cast %74 : vector<1x1x1x16x4xbf16> to vector<16x4xbf16>
      %c9 = arith.constant 9 : index
      %c0_74 = arith.constant 0 : index
      %c0_75 = arith.constant 0 : index
      %76 = vector.load %arg4[%c9, %c0_74, %c0_75] : memref<16x4x64xbf16, #tpu.memory_space<vmem>>, vector<1x4x64xbf16>
      %77 = vector.shape_cast %76 : vector<1x4x64xbf16> to vector<4x64xbf16>
      %cst_76 = arith.constant dense<0.000000e+00> : vector<16x64xf32>
      %78 = tpu.matmul %75, %77, %cst_76 {dimension_numbers = #tpu.dot_dimension_numbers<[1], [0], [0], [1], [0, 0, 1, 1], [], []>} : vector<16x4xbf16>, vector<4x64xbf16>, vector<16x64xf32> -> vector<16x64xf32>
      %79 = arith.addf %72, %78 : vector<16x64xf32>
      %c0_77 = arith.constant 0 : index
      %80 = arith.index_cast %65 : i32 to index
      %c0_78 = arith.constant 0 : index
      %c1_79 = arith.constant 1 : index
      %c0_80 = arith.constant 0 : index
      %81 = vector.load %arg3[%c0_77, %80, %c0_78, %c1_79, %c0_80] : memref<1x34x2x17x4xbf16, #tpu.memory_space<vmem>>, vector<1x1x1x16x4xbf16>
      %82 = vector.shape_cast %81 : vector<1x1x1x16x4xbf16> to vector<16x4xbf16>
      %c10 = arith.constant 10 : index
      %c0_81 = arith.constant 0 : index
      %c0_82 = arith.constant 0 : index
      %83 = vector.load %arg4[%c10, %c0_81, %c0_82] : memref<16x4x64xbf16, #tpu.memory_space<vmem>>, vector<1x4x64xbf16>
      %84 = vector.shape_cast %83 : vector<1x4x64xbf16> to vector<4x64xbf16>
      %cst_83 = arith.constant dense<0.000000e+00> : vector<16x64xf32>
      %85 = tpu.matmul %82, %84, %cst_83 {dimension_numbers = #tpu.dot_dimension_numbers<[1], [0], [0], [1], [0, 0, 1, 1], [], []>} : vector<16x4xbf16>, vector<4x64xbf16>, vector<16x64xf32> -> vector<16x64xf32>
      %86 = arith.addf %79, %85 : vector<16x64xf32>
      %c0_84 = arith.constant 0 : index
      %87 = arith.index_cast %65 : i32 to index
      %c1_85 = arith.constant 1 : index
      %c1_86 = arith.constant 1 : index
      %c0_87 = arith.constant 0 : index
      %88 = vector.load %arg3[%c0_84, %87, %c1_85, %c1_86, %c0_87] : memref<1x34x2x17x4xbf16, #tpu.memory_space<vmem>>, vector<1x1x1x16x4xbf16>
      %89 = vector.shape_cast %88 : vector<1x1x1x16x4xbf16> to vector<16x4xbf16>
      %c11 = arith.constant 11 : index
      %c0_88 = arith.constant 0 : index
      %c0_89 = arith.constant 0 : index
      %90 = vector.load %arg4[%c11, %c0_88, %c0_89] : memref<16x4x64xbf16, #tpu.memory_space<vmem>>, vector<1x4x64xbf16>
      %91 = vector.shape_cast %90 : vector<1x4x64xbf16> to vector<4x64xbf16>
      %cst_90 = arith.constant dense<0.000000e+00> : vector<16x64xf32>
      %92 = tpu.matmul %89, %91, %cst_90 {dimension_numbers = #tpu.dot_dimension_numbers<[1], [0], [0], [1], [0, 0, 1, 1], [], []>} : vector<16x4xbf16>, vector<4x64xbf16>, vector<16x64xf32> -> vector<16x64xf32>
      %93 = arith.addf %86, %92 : vector<16x64xf32>
      %c2_i32_91 = arith.constant 2 : i32
      %94 = arith.muli %2, %c2_i32_91 : i32
      %c3_i32 = arith.constant 3 : i32
      %95 = arith.addi %94, %c3_i32 : i32
      %c0_92 = arith.constant 0 : index
      %96 = arith.index_cast %95 : i32 to index
      %c0_93 = arith.constant 0 : index
      %c0_94 = arith.constant 0 : index
      %c0_95 = arith.constant 0 : index
      %97 = vector.load %arg3[%c0_92, %96, %c0_93, %c0_94, %c0_95] : memref<1x34x2x17x4xbf16, #tpu.memory_space<vmem>>, vector<1x1x1x16x4xbf16>
      %98 = vector.shape_cast %97 : vector<1x1x1x16x4xbf16> to vector<16x4xbf16>
      %c12 = arith.constant 12 : index
      %c0_96 = arith.constant 0 : index
      %c0_97 = arith.constant 0 : index
      %99 = vector.load %arg4[%c12, %c0_96, %c0_97] : memref<16x4x64xbf16, #tpu.memory_space<vmem>>, vector<1x4x64xbf16>
      %100 = vector.shape_cast %99 : vector<1x4x64xbf16> to vector<4x64xbf16>
      %cst_98 = arith.constant dense<0.000000e+00> : vector<16x64xf32>
      %101 = tpu.matmul %98, %100, %cst_98 {dimension_numbers = #tpu.dot_dimension_numbers<[1], [0], [0], [1], [0, 0, 1, 1], [], []>} : vector<16x4xbf16>, vector<4x64xbf16>, vector<16x64xf32> -> vector<16x64xf32>
      %102 = arith.addf %93, %101 : vector<16x64xf32>
      %c0_99 = arith.constant 0 : index
      %103 = arith.index_cast %95 : i32 to index
      %c1_100 = arith.constant 1 : index
      %c0_101 = arith.constant 0 : index
      %c0_102 = arith.constant 0 : index
      %104 = vector.load %arg3[%c0_99, %103, %c1_100, %c0_101, %c0_102] : memref<1x34x2x17x4xbf16, #tpu.memory_space<vmem>>, vector<1x1x1x16x4xbf16>
      %105 = vector.shape_cast %104 : vector<1x1x1x16x4xbf16> to vector<16x4xbf16>
      %c13 = arith.constant 13 : index
      %c0_103 = arith.constant 0 : index
      %c0_104 = arith.constant 0 : index
      %106 = vector.load %arg4[%c13, %c0_103, %c0_104] : memref<16x4x64xbf16, #tpu.memory_space<vmem>>, vector<1x4x64xbf16>
      %107 = vector.shape_cast %106 : vector<1x4x64xbf16> to vector<4x64xbf16>
      %cst_105 = arith.constant dense<0.000000e+00> : vector<16x64xf32>
      %108 = tpu.matmul %105, %107, %cst_105 {dimension_numbers = #tpu.dot_dimension_numbers<[1], [0], [0], [1], [0, 0, 1, 1], [], []>} : vector<16x4xbf16>, vector<4x64xbf16>, vector<16x64xf32> -> vector<16x64xf32>
      %109 = arith.addf %102, %108 : vector<16x64xf32>
      %c0_106 = arith.constant 0 : index
      %110 = arith.index_cast %95 : i32 to index
      %c0_107 = arith.constant 0 : index
      %c1_108 = arith.constant 1 : index
      %c0_109 = arith.constant 0 : index
      %111 = vector.load %arg3[%c0_106, %110, %c0_107, %c1_108, %c0_109] : memref<1x34x2x17x4xbf16, #tpu.memory_space<vmem>>, vector<1x1x1x16x4xbf16>
      %112 = vector.shape_cast %111 : vector<1x1x1x16x4xbf16> to vector<16x4xbf16>
      %c14 = arith.constant 14 : index
      %c0_110 = arith.constant 0 : index
      %c0_111 = arith.constant 0 : index
      %113 = vector.load %arg4[%c14, %c0_110, %c0_111] : memref<16x4x64xbf16, #tpu.memory_space<vmem>>, vector<1x4x64xbf16>
      %114 = vector.shape_cast %113 : vector<1x4x64xbf16> to vector<4x64xbf16>
      %cst_112 = arith.constant dense<0.000000e+00> : vector<16x64xf32>
      %115 = tpu.matmul %112, %114, %cst_112 {dimension_numbers = #tpu.dot_dimension_numbers<[1], [0], [0], [1], [0, 0, 1, 1], [], []>} : vector<16x4xbf16>, vector<4x64xbf16>, vector<16x64xf32> -> vector<16x64xf32>
      %116 = arith.addf %109, %115 : vector<16x64xf32>
      %c0_113 = arith.constant 0 : index
      %117 = arith.index_cast %95 : i32 to index
      %c1_114 = arith.constant 1 : index
      %c1_115 = arith.constant 1 : index
      %c0_116 = arith.constant 0 : index
      %118 = vector.load %arg3[%c0_113, %117, %c1_114, %c1_115, %c0_116] : memref<1x34x2x17x4xbf16, #tpu.memory_space<vmem>>, vector<1x1x1x16x4xbf16>
      %119 = vector.shape_cast %118 : vector<1x1x1x16x4xbf16> to vector<16x4xbf16>
      %c15 = arith.constant 15 : index
      %c0_117 = arith.constant 0 : index
      %c0_118 = arith.constant 0 : index
      %120 = vector.load %arg4[%c15, %c0_117, %c0_118] : memref<16x4x64xbf16, #tpu.memory_space<vmem>>, vector<1x4x64xbf16>
      %121 = vector.shape_cast %120 : vector<1x4x64xbf16> to vector<4x64xbf16>
      %cst_119 = arith.constant dense<0.000000e+00> : vector<16x64xf32>
      %122 = tpu.matmul %119, %121, %cst_119 {dimension_numbers = #tpu.dot_dimension_numbers<[1], [0], [0], [1], [0, 0, 1, 1], [], []>} : vector<16x4xbf16>, vector<4x64xbf16>, vector<16x64xf32> -> vector<16x64xf32>
      %123 = arith.addf %116, %122 : vector<16x64xf32>
      %cst_120 = arith.constant 0.000000e+00 : f32
      %124 = vector.broadcast %cst_120 : f32 to vector<16x64xf32>
      %125 = arith.cmpf oge, %123, %124 : vector<16x64xf32>
      %cst_121 = arith.constant 2.000000e-01 : f32
      %126 = vector.broadcast %cst_121 : f32 to vector<16x64xf32>
      %127 = arith.mulf %126, %123 : vector<16x64xf32>
      %128 = arith.select %125, %123, %127 : vector<16x64xi1>, vector<16x64xf32>
      %129 = vector.shape_cast %128 : vector<16x64xf32> to vector<1x1x16x64xf32>
      %c0_122 = arith.constant 0 : index
      %130 = arith.index_cast %arg6 : i32 to index
      %c0_123 = arith.constant 0 : index
      %c0_124 = arith.constant 0 : index
      %131 = vector.load %arg5[%c0_122, %130, %c0_123, %c0_124] : memref<1x8x16x64xf32, #tpu.memory_space<vmem>>, vector<1x1x16x64xf32>
      tpu.vector_store %arg5[%c0_122, %130, %c0_123, %c0_124], %129 {strides = array<i32>} : memref<1x8x16x64xf32, #tpu.memory_space<vmem>>, vector<1x1x16x64xf32>,
    }
    %c8_i32_0 = arith.constant 8 : i32
    return
  }
  func.func @transform_0(%arg0: i32, %arg1: i32, %arg2: i32) -> (i32, i32, i32, i32, i32) {
    %c0_i32 = arith.constant 0 : i32
    %c0_i32_0 = arith.constant 0 : i32
    %c0_i32_1 = arith.constant 0 : i32
    %c0_i32_2 = arith.constant 0 : i32
    %c0_i32_3 = arith.constant 0 : i32
    return %arg0, %c0_i32, %c0_i32_0, %c0_i32_1, %c0_i32_2 : i32, i32, i32, i32, i32
  }
  func.func @transform_1(%arg0: i32, %arg1: i32, %arg2: i32) -> (i32, i32, i32) {
    %c0_i32 = arith.constant 0 : i32
    %c0_i32_0 = arith.constant 0 : i32
    %c0_i32_1 = arith.constant 0 : i32
    return %c0_i32, %c0_i32_0, %arg2 : i32, i32, i32
  }
  func.func @transform_2(%arg0: i32, %arg1: i32, %arg2: i32) -> (i32, i32, i32, i32) {
    %c0_i32 = arith.constant 0 : i32
    %c0_i32_0 = arith.constant 0 : i32
    return %arg0, %arg1, %c0_i32, %arg2 : i32, i32, i32, i32
  }
}

</mosaic_0001>

<bundles_post_ra>
// kernel: tpu_custom_call.1
= control target key start
LH: loop header
LB: loop body
LE: loop exit
PB: predicated region body
PF: predicated region fallthrough
CT: control target
= control target key end

     0   :  { %7 = vsyncpa [#allocation3], 0  ;;  %s2332_s0 = inlined_call_operand.vmem [shape: bf16[2,34,2,17,4], index: 0, kind: input, shape index: {}]   ;;  %s2333_s1 = inlined_call_operand.vmem [shape: bf16[16,4,64], index: 1, kind: input, shape index: {}]   ;;  %s2334_s2 = inlined_call_operand.hbm [shape: f32[2,16,16,64], index: 2, kind: output, shape index: {}]  }
   0x1   :  { %9 = vsyncpa [#allocation3 + $0x1], 0  ;;  %s2007_s9 = smov 0   ;;  %s2009_s10 = smov 0  }
   0x2   :  { %s2011_s11 = smov 0   ;;  %s2013_s12 = smov 0  }
   0x3   :  { %s2015_s13 = smov 0   ;;  %s2017_s14 = smov 0  }
   0x4   :  { %s2019_s15 = smov 0   ;;  %s2021_s16 = smov 0  }
   0x5 LB: > { %s1454_s17 = sadd.s32 4294967295, %s1981_s16   ;;  %s1455_s18 = sadd.s32 4294967294, %s1981_s16   ;;  %s1981_s16 = sphi %s2021_s16, %s15_s16   ;;  %s1977_s15 = sphi %s2019_s15, %s2343_s15   ;;  %s1973_s14 = sphi %s2017_s14, %s2342_s14   ;;  %s1969_s13 = sphi %s2015_s13, %s2341_s13   ;;  %s1965_s12 = sphi %s2013_s12, %s2340_s12   ;;  %s1961_s11 = sphi %s2011_s11, %s2339_s11   ;;  %s1957_s10 = sphi %s2009_s10, %s2338_s10   ;;  %s1953_s9 = sphi %s2007_s9, %s2337_s9  }
   0x6   : > { %s30_s19 = sadd.s32 1, %s1973_s14  ;;  %s34_s20 = sadd.s32 1, %s1977_s15 }
   0x7   : > { %p32_p0 = scmp.ge.s32.totalorder %s30_s19, 2  ;;  %p107_p1 = scmp.ne.s32.totalorder %s1961_s11, %s1957_s10 }
   0x8   : > { %p108_p2 = scmp.eq.s32.totalorder %s1454_s17, 3  ;;  %p113_p5 = scmp.ne.s32.totalorder %s1957_s10, %s1953_s9 }
   0x9   : > { %s2345_s19 = smov (%p32_p0, %s30_s19), 0  ;;  %s2347_s20 = smov (!%p32_p0, %s34_s20), %s1977_s15 }
   0xa   : > { %s91_s21 = ssub.s32 %s1973_s14, %s2345_s19  ;;  %p2058_p3 = por %p108_p2, %p107_p1 }
   0xb   : > { %p36_p4 = scmp.ge.s32.totalorder %s2347_s20, 2  ;;  %p114_p6 = scmp.eq.s32.totalorder %s1455_s18, 3 }
   0xc   : > { %p1459_p7 = scmp.ge.s32.totalorder %s1981_s16, 1  ;;  %p147_p9 = scmp.lt.s32.totalorder %s1981_s16, 5 }
   0xd   : > { %s2349_s20 = smov (%p36_p4, %s2347_s20), 0  ;;  %p2067_p8 = por %p114_p6, %p113_p5 }
   0xe   : > { %s90_s24 = ssub.s32 %s1977_s15, %s2349_s20  ;;  %s97_s25 = sadd.s32 1, %s1961_s11 }
   0xf   : > { %s92_s26 = sor.u32 %s91_s21, %s90_s24  ;;  %p148_p10 = pnand %p1459_p7, %p147_p9 }
  0x10   : > { %p95_p11 = scmp.eq.s32.totalorder %s92_s26, 0  ;;  %s170_s28 = sand.u32 (!%p148_p10), 1, %s1957_s10  }
  0x11   : > { %151 = sbr.rel (%p148_p10) target bundleno = 355 (0x163), region = 28  ;;  %p173_p12 = scmp.lt.s32.totalorder (!%p148_p10), %s1969_s13, 1 }
  0x12   : > { %s2076_s27 = scalar_select %p95_p11, %s1961_s11, %s97_s25  }
  0x13   : > { %s2082_s29 = sshll.u32 (!%p148_p10), %s170_s28, 7  ;;  %s2091_s8 = smov (!%p148_p10), 0  }
  0x14   : > { %s172_s7 = scalar_lea.vmem (!%p148_p10), [#allocation2], %s2082_s29 }
  0x18   : > { %s174_s30 = scalar_select %p173_p12, %s1969_s13, 1 }
  0x1a   : > { %s1775_s3 = smul.u32 816, %s174_s30 }
  0x1c   : > { %s2088_s6 = scalar_lea.vmem %s2332_s0, %s1775_s3 }
  0x1d LB: >> { %v1470_v0 = vld [vmem:[%s2333_s1 + $0x2] sm:$0x3]  ;;  %vm215_vm0 = vcmask 1041408   ;;  %v1522_v1 = vld [vmem:[%s2333_s1 + $0x10] sm:$0x3]  ;;  %v1987_v2 = vmov 0.0   ;;  %s1985_s8 = sphi %s2091_s8, %s189_s8  }
  0x1e   : >> { %1621 = vmatprep.subr.bf16.mxu1 %v1987_v2  ;;  %1669 = vmatprep.subr.bf16.mxu0 %v1987_v2  ;;  %v217_v3 = vsel %vm215_vm0, %v1470_v0, 0  ;;  %v749_v4 = vsel %vm215_vm0, %v1522_v1, 0  ;;  %s1462_s25 = sshll.u32 %s1965_s12, 3  ;;  %vm1988_vm1 = vmmov 0   ;;  %v198_v5 = vld [vmem:[%s2333_s1] sm:$0x3] }
  0x1f   : >> { %1622 = vmatpush3.bf16.msra.mxu1 %v217_v3  ;;  %1670 = vmatpush3.bf16.msra.mxu0 %v749_v4  ;;  %s191_s26 = sadd.s32 %s1985_s8, %s1462_s25  ;;  %v1531_v6 = vld [vmem:[%s2333_s1 + $0x12] sm:$0x3]  ;;  %vm211_vm2 = vcmask 31744   ;;  %v269_v8 = vsel %vm215_vm0, %v198_v5, 0  ;;  %v1475_v11 = vld [vmem:[%s2333_s1 + $0x4] sm:$0x3] }
  0x20   : >> { %1623 = vmatprep.mubr.msk.bf16.mxu1 %vm1988_vm1, %v1987_v2  ;;  %1627 = vmatprep.subr.bf16.mxu1 %v1987_v2  ;;  %s1587_s30 = smul.u32 48, %s191_s26  ;;  %v810_v10 = vsel %vm215_vm0, %v1531_v6, 0  ;;  %v1537_v14 = vld [vmem:[%s2333_s1 + $0x14] sm:$0x3]  ;;  %v342_v16 = vsel %vm215_vm0, %v1475_v11, 0  ;;  %vm1282_vm5 = vcmask 523264  }
  0x21   : >> { %1671 = vmatprep.mubr.msk.bf16.mxu0 %vm1988_vm1, %v1987_v2  ;;  %1675 = vmatprep.subr.bf16.mxu0 %v1987_v2  ;;  %v884_v22 = vsel %vm215_vm0, %v1537_v14, 0  ;;  %vm325_vm3 = vsmask.f32 7424  ;;  %v1482_v35 = vld [vmem:[%s2333_s1 + $0x6] sm:$0x3] }
  0x22   : >> { %s2121_s18 = scalar_lea.vmem %s2088_s6, %s1587_s30  ;;  %v1544_v36 = vld [vmem:[%s2333_s1 + $0x16] sm:$0x3]  ;;  %v416_v40 = vsel %vm215_vm0, %v1482_v35, 0  ;;  %v1491_v55 = vld [vmem:[%s2333_s1 + $0x8] sm:$0x3] }
  0x23   : >> { %v1859_v7 = vld [vmem:[%s2121_s18 + $0xc] sm:$0xff]   ;;  %v1863_v12 = vld [vmem:[%s2121_s18] sm:$0xff]   ;;  %v1864_v18 = vld [vmem:[%s2121_s18 + $0x8] ss:$0 sps:$4 sm:$0x11]   ;;  %v958_v44 = vsel %vm215_vm0, %v1544_v36, 0 }
  0x24   : >> { %v1860_v9 = vld [vmem:[%s2121_s18 + $0x30] sm:$0xff]   ;;  %1624 = vmatmul.mubr.msk.bf16.vlgmr.msra.gmra.mrb[0].mxu1 %vm211_vm2, %v1859_v7  ;;  %v1861_v15 = vld [vmem:[%s2121_s18] sm:$0xff]   ;;  %v329_v19 = vshll.u32 %v1863_v12, 16  ;;  %v1866_v20 = vld [vmem:[%s2121_s18 + $0x38] ss:$0 sps:$4 sm:$0x11]  }
  0x25   : >> { %1628 = vmatpush3.bf16.msra.mxu1 %v269_v8  ;;  %1672 = vmatmul.mubr.msk.bf16.vlgmr.msra.gmra.mrb[0].mxu0 %vm211_vm2, %v1860_v9  ;;  %v1865_v13 = vld [vmem:[%s2121_s18 + $0x30] sm:$0xff]   ;;  %v1862_v17 = vld [vmem:[%s2121_s18 + $0x3c] sm:$0xff]   ;;  %v327_v23 = vshrl.u32 %v1863_v12, 16  ;;  %v334_v25 = vshll.u32 %v1864_v18, 16  ;;  %v876_v28 = vshll.u32 %v1866_v20, 16  ;;  %v478_v58 = vsel %vm215_vm0, %v1491_v55, 0 }
  0x26   : >> { %1676 = vmatpush3.bf16.msra.mxu0 %v810_v10  ;;  %1629 = vmatprep.mubr.msk.bf16.mxu1 %vm1988_vm1, %v1987_v2  ;;  %v871_v21 = vshll.u32 %v1865_v13, 16  ;;  %v331_v24 = vrot.slane %v329_v19, 1  ;;  %v869_v26 = vshrl.u32 %v1865_v13, 16  ;;  %v1867_v31 = vld [vmem:[%s2121_s18 + $0xc] sm:$0xff]   ;;  %v1869_v34 = vld [vmem:[%s2121_s18 + $0x3c] sm:$0xff]   ;;  %v1873_v7 = vld [vmem:[%s2121_s18 + $0x24] sm:$0xff]  }
  0x27   : >> { %1633 = vmatprep.subr.bf16.mxu1 %v1987_v2  ;;  %1677 = vmatprep.mubr.msk.bf16.mxu0 %vm1988_vm1, %v1987_v2  ;;  %v336_v30 = vrot.slane %v334_v25, 1  ;;  %v878_v33 = vrot.slane %v876_v28, 1  ;;  %v1868_v37 = vld [vmem:[%s2121_s18 + $0x14] ss:$0 sps:$4 sm:$0x11]   ;;  %v403_v39 = vshll.u32 %v1867_v31, 16 }
  0x28   : >> { %1681 = vmatprep.subr.bf16.mxu0 %v1987_v2  ;;  %v873_v27 = vrot.slane %v871_v21, 1  ;;  %v332_v29 = vor.u32 %v331_v24, %v327_v23  ;;  %v1870_v42 = vld [vmem:[%s2121_s18 + $0x44] ss:$0 sps:$4 sm:$0x11]   ;;  %v945_v43 = vshll.u32 %v1869_v34, 16  ;;  %v401_v45 = vshrl.u32 %v1867_v31, 16 }
  0x29   : >> { %v405_v46 = vrot.slane %v403_v39, 1  ;;  %v408_v47 = vshll.u32 %v1868_v37, 16  ;;  %v943_v48 = vshrl.u32 %v1869_v34, 16  ;;  %v950_v50 = vshll.u32 %v1870_v42, 16  ;;  %v1553_v56 = vld [vmem:[%s2333_s1 + $0x18] sm:$0x3] }
  0x2a   : >> { %v874_v32 = vor.u32 %v873_v27, %v869_v26  ;;  %v337_v38 = vsel %vm325_vm3, %v332_v29, %v336_v30  ;;  %v947_v49 = vrot.slane %v945_v43, 1  ;;  %v1020_v60 = vsel %vm215_vm0, %v1553_v56, 0  ;;  %v1500_v61 = vld [vmem:[%s2333_s1 + $0xa] sm:$0x3]  ;;  %v1871_v62 = vld [vmem:[%s2121_s18 + $0x18] sm:$0xff]  }
  0x2b   : >> { %v406_v51 = vor.u32 %v405_v46, %v401_v45  ;;  %v410_v52 = vrot.slane %v408_v47, 1  ;;  %v952_v54 = vrot.slane %v950_v50, 1  ;;  %v1562_v63 = vld [vmem:[%s2333_s1 + $0x1a] sm:$0x3]  ;;  %v1872_v0 = vld [vmem:[%s2121_s18 + $0x48] sm:$0xff]   ;;  %v539_v1 = vsel %vm215_vm0, %v1500_v61, 0 }
  0x2c   : >> { %v879_v41 = vsel %vm325_vm3, %v874_v32, %v878_v33  ;;  %v948_v53 = vor.u32 %v947_v49, %v943_v48  ;;  %v1081_v3 = vsel %vm215_vm0, %v1562_v63, 0  ;;  %v1875_v4 = vld [vmem:[%s2121_s18 + $0x18] sm:$0xff]   ;;  %v1877_v5 = vld [vmem:[%s2121_s18 + $0x48] sm:$0xff]   ;;  %v1876_v10 = vld [vmem:[%s2121_s18 + $0x20] ss:$0 sps:$4 sm:$0x11]  }
  0x2d   : >> { %v411_v57 = vsel %vm325_vm3, %v406_v51, %v410_v52  ;;  %v1506_v6 = vld [vmem:[%s2333_s1 + $0xc] sm:$0x3]  ;;  %v1568_v8 = vld [vmem:[%s2333_s1 + $0x1c] sm:$0x3]  ;;  %v1874_v9 = vld [vmem:[%s2121_s18 + $0x54] sm:$0xff]   ;;  %v600_v11 = vshll.u32 %v1875_v4, 16 }
  0x2e   : >> { %v953_v59 = vsel %vm325_vm3, %v948_v53, %v952_v54  ;;  %v613_v12 = vsel %vm215_vm0, %v1506_v6, 0  ;;  %v1878_v13 = vld [vmem:[%s2121_s18 + $0x50] ss:$0 sps:$4 sm:$0x11]   ;;  %v1142_v14 = vshll.u32 %v1877_v5, 16  ;;  %v605_v18 = vshll.u32 %v1876_v10, 16 }
  0x2f   : >> { %v1140_v19 = vshrl.u32 %v1877_v5, 16  ;;  %v1147_v21 = vshll.u32 %v1878_v13, 16  ;;  %v1879_v24 = vld [vmem:[%s2121_s18 + $0x24] sm:$0xff]   ;;  %v1881_v27 = vld [vmem:[%s2121_s18 + $0x54] sm:$0xff]   ;;  %v1513_v28 = vld [vmem:[%s2333_s1 + $0xe] sm:$0x3] }
  0x30   : >> { %1630 = vmatmul.mubr.msk.bf16.vlgmr.msra.gmra.mrb[0].mxu1 %vm211_vm2, %v1861_v15  ;;  %v1155_v15 = vsel %vm215_vm0, %v1568_v8, 0  ;;  %v1144_v20 = vrot.slane %v1142_v14, 1  ;;  %v607_v23 = vrot.slane %v605_v18, 1  ;;  %v1575_v29 = vld [vmem:[%s2333_s1 + $0x1e] sm:$0x3]  ;;  %v674_v32 = vshll.u32 %v1879_v24, 16 }
  0x31   : >> { %1634 = vmatpush3.bf16.msra.mxu1 %v342_v16  ;;  %1678 = vmatmul.mubr.msk.bf16.vlgmr.msra.gmra.mrb[0].mxu0 %vm211_vm2, %v1862_v17  ;;  %v598_v16 = vshrl.u32 %v1875_v4, 16  ;;  %v602_v17 = vrot.slane %v600_v11, 1  ;;  %v1149_v26 = vrot.slane %v1147_v21, 1  ;;  %v1880_v31 = vld [vmem:[%s2121_s18 + $0x2c] ss:$0 sps:$4 sm:$0x11]  }
  0x32   : >> { %1682 = vmatpush3.bf16.msra.mxu0 %v884_v22  ;;  %1635 = vmatprep.mubr.msk.bf16.mxu1 %vm1988_vm1, %v1987_v2  ;;  %v1145_v25 = vor.u32 %v1144_v20, %v1140_v19  ;;  %v687_v33 = vsel %vm215_vm0, %v1513_v28, 0  ;;  %v1882_v35 = vld [vmem:[%s2121_s18 + $0x5c] ss:$0 sps:$4 sm:$0x11]   ;;  %v1216_v36 = vshll.u32 %v1881_v27, 16  ;;  %v1229_v37 = vsel %vm215_vm0, %v1575_v29, 0 }
  0x33   : >> { %1639 = vmatprep.subr.bf16.mxu1 %v1987_v2  ;;  %1683 = vmatprep.mubr.msk.bf16.mxu0 %vm1988_vm1, %v1987_v2  ;;  %v603_v22 = vor.u32 %v602_v17, %v598_v16  ;;  %v676_v39 = vrot.slane %v674_v32, 1  ;;  %v1221_v43 = vshll.u32 %v1882_v35, 16  ;;  %s1579_s18 = sshll.u32 %s1985_s8, 4  ;;  %s189_s8 = sadd.s32 1, %s1985_s8  }
  0x34   : >> { %1687 = vmatprep.subr.bf16.mxu0 %v1987_v2  ;;  %v1150_v34 = vsel %vm325_vm3, %v1145_v25, %v1149_v26  ;;  %v1218_v42 = vrot.slane %v1216_v36, 1  ;;  %s1281_s4 = scalar_lea.vmem %s172_s7, %s1579_s18 [#allocation2]  ;;  %p186_p13 = scmp.ge.s32.totalorder %s189_s8, 8  }
  0x35   : >> { %v608_v30 = vsel %vm325_vm3, %v603_v22, %v607_v23  ;;  %v1223_v47 = vrot.slane %v1221_v43, 1  ;;  %s1588_s5 = sshll.u32 (%p186_p13), %s1965_s12, 4  ;;  %s1583_s17 = sshll.u32 (%p186_p13), %s1969_s13, 5 }
  0x36   : > { %s1303_s21 = sshll.u32 (%p186_p13), %s172_s7, 4  ;;  %s1300_s24 = sadd.s32 (%p186_p13), %s1588_s5, %s1583_s17  ;;  %s2271_s21 = int_to_ptr.vmem [resolvable:$true] %s1303_s21 }
  0x37   : > { %s1584_s25 = sshll.u32 (%p186_p13), %s1300_s24, 7  ;;  %s2280_s6 = scalar_lea.sflag (%p186_p13), [#allocation3], %s170_s28 }
  0x38   : > { %s2276_s8 = scalar_lea.hbm (%p186_p13), %s2334_s2, %s1584_s25  ;;  %s1883_s3 = scalar_lea.vmem (%p186_p13), %s2271_s21, 2048 }
  0x39   : > { %p1884_p0 = scmp.ne.s32.totalorder (%p186_p13), %s2271_s21, %s1883_s3  ;;  %s1989_s12 = smov (%p186_p13), [#allocation2]  }
  0x3a   : > { %s1887_s13 = sshll.u32 (%p186_p13), %s1989_s12, 4  ;;  %s1888_s13 = int_to_ptr.vmem [resolvable:$false] %s1887_s13 }
  0x3b   : > { %p1885_p1 = pnand (%p186_p13), %p1884_p0, %p2058_p3  ;;  %s1889_s29 = scalar_lea.vmem (%p186_p13), %s1888_s13, 4096 }
  0x3c   : >> { %1636 = vmatmul.mubr.msk.bf16.vlgmr.msra.gmra.mrb[0].mxu1 %vm211_vm2, %v337_v38  ;;  %v672_v38 = vshrl.u32 %v1879_v24, 16  ;;  %p1890_p4 = scmp.lt.s32.totalorder (%p186_p13), %s2271_s21, %s1888_s13  ;;  %p1891_p5 = scmp.lt.s32.totalorder (%p186_p13), %s1889_s29, %s1883_s3 }
  0x3d   : >> { %1640 = vmatpush3.bf16.msra.mxu1 %v416_v40  ;;  %1684 = vmatmul.mubr.msk.bf16.vlgmr.msra.gmra.mrb[0].mxu0 %vm211_vm2, %v879_v41  ;;  %v679_v40 = vshll.u32 %v1880_v31, 16  ;;  %v1214_v41 = vshrl.u32 %v1881_v27, 16  ;;  %p1886_p2 = pneg (%p186_p13), %p1885_p1 }
  0x3e   : >> { %1688 = vmatpush3.bf16.msra.mxu0 %v958_v44  ;;  %1641 = vmatprep.mubr.msk.bf16.mxu1 %vm1988_vm1, %v1987_v2  ;;  %v677_v44 = vor.u32 %v676_v39, %v672_v38  ;;  %p1892_p6 = por (%p186_p13), %p1891_p5, %p1890_p4 }
  0x3f   : >> { %1645 = vmatprep.subr.bf16.mxu1 %v1987_v2  ;;  %1689 = vmatprep.mubr.msk.bf16.mxu0 %vm1988_vm1, %v1987_v2  ;;  %v681_v45 = vrot.slane %v679_v40, 1  ;;  %v1219_v46 = vor.u32 %v1218_v42, %v1214_v41 }
  0x40   : >> { %1693 = vmatprep.subr.bf16.mxu0 %v1987_v2  ;;  %p1893_p7 = pnand (%p186_p13), %p1892_p6, %p1886_p2 }
  0x41   : >> { %v682_v48 = vsel %vm325_vm3, %v677_v44, %v681_v45  ;;  %v1224_v49 = vsel %vm325_vm3, %v1219_v46, %v1223_v47 }
  0x48   : >> { %1642 = vmatmul.mubr.msk.bf16.vlgmr.msra.gmra.mrb[0].mxu1 %vm211_vm2, %v411_v57 }
  0x49   : >> { %1646 = vmatpush3.bf16.msra.mxu1 %v478_v58  ;;  %1690 = vmatmul.mubr.msk.bf16.vlgmr.msra.gmra.mrb[0].mxu0 %vm211_vm2, %v953_v59 }
  0x4a   : >> { %1694 = vmatpush3.bf16.msra.mxu0 %v1020_v60  ;;  %1647 = vmatprep.mubr.msk.bf16.mxu1 %vm1988_vm1, %v1987_v2 }
  0x4b   : >> { %1651 = vmatprep.subr.bf16.mxu1 %v1987_v2  ;;  %1695 = vmatprep.mubr.msk.bf16.mxu0 %vm1988_vm1, %v1987_v2 }
  0x4c   : >> { %1699 = vmatprep.subr.bf16.mxu0 %v1987_v2 }
  0x54   : >> { %1648 = vmatmul.mubr.msk.bf16.vlgmr.msra.gmra.mrb[0].mxu1 %vm211_vm2, %v1871_v62 }
  0x55   : >> { %1652 = vmatpush3.bf16.msra.mxu1 %v539_v1  ;;  %1696 = vmatmul.mubr.msk.bf16.vlgmr.msra.gmra.mrb[0].mxu0 %vm211_vm2, %v1872_v0 }
  0x56   : >> { %1700 = vmatpush3.bf16.msra.mxu0 %v1081_v3  ;;  %1653 = vmatprep.mubr.msk.bf16.mxu1 %vm1988_vm1, %v1987_v2 }
  0x57   : >> { %1657 = vmatprep.subr.bf16.mxu1 %v1987_v2  ;;  %1701 = vmatprep.mubr.msk.bf16.mxu0 %vm1988_vm1, %v1987_v2 }
  0x58   : >> { %1705 = vmatprep.subr.bf16.mxu0 %v1987_v2 }
  0x60   : >> { %1654 = vmatmul.mubr.msk.bf16.vlgmr.msra.gmra.mrb[0].mxu1 %vm211_vm2, %v1873_v7 }
  0x61   : >> { %1658 = vmatpush3.bf16.msra.mxu1 %v613_v12  ;;  %1702 = vmatmul.mubr.msk.bf16.vlgmr.msra.gmra.mrb[0].mxu0 %vm211_vm2, %v1874_v9 }
  0x62   : >> { %1706 = vmatpush3.bf16.msra.mxu0 %v1155_v15  ;;  %1659 = vmatprep.mubr.msk.bf16.mxu1 %vm1988_vm1, %v1987_v2 }
  0x63   : >> { %1663 = vmatprep.subr.bf16.mxu1 %v1987_v2  ;;  %1707 = vmatprep.mubr.msk.bf16.mxu0 %vm1988_vm1, %v1987_v2 }
  0x64   : >> { %1711 = vmatprep.subr.bf16.mxu0 %v1987_v2 }
  0x6c   : >> { %1660 = vmatmul.mubr.msk.bf16.vlgmr.msra.gmra.mrb[0].mxu1 %vm211_vm2, %v608_v30 }
  0x6d   : >> { %1664 = vmatpush3.bf16.msra.mxu1 %v687_v33  ;;  %1708 = vmatmul.mubr.msk.bf16.vlgmr.msra.gmra.mrb[0].mxu0 %vm211_vm2, %v1150_v34 }
  0x6e   : >> { %1712 = vmatpush3.bf16.msra.mxu0 %v1229_v37  ;;  %1665 = vmatprep.mubr.msk.bf16.mxu1 %vm1988_vm1, %v1987_v2 }
  0x6f   : >> { %1713 = vmatprep.mubr.msk.bf16.mxu0 %vm1988_vm1, %v1987_v2 }
  0x78   : >> { %1666 = vmatmul.mubr.msk.bf16.vlgmr.msra.gmra.mrb[0].mxu1 %vm211_vm2, %v682_v48 }
  0x79   : >> { %1714 = vmatmul.mubr.msk.bf16.vlgmr.msra.gmra.mrb[0].mxu0 %vm211_vm2, %v1224_v49 }
 0x14b   : >> { %v723_v50 = vpop.f32.mrb[0].mxu1 }
 0x14c   : >> { %v1265_v51 = vpop.f32.mrb[0].mxu0  ;;  %v1667_v52 = vpop.f32.mrb[1].mxu1 }
 0x14d   : >> { %v1717_v53 = vadd.f32 %v1265_v51, %v723_v50  ;;  %v1715_v54 = vpop.f32.mrb[1].mxu0  ;;  %v726_v2 = vpop.f32.mrb[2].mxu1 }
 0x14e   : >> { %v1268_v55 = vpop.f32.mrb[2].mxu0  ;;  %v1668_v56 = vpop.f32.mrb[3].mxu1  ;;  %188 = sbr.rel (!%p186_p13) target bundleno = 29 (0x1d), region = 97 }
 0x14f   : >> { %vm1274_vm4 = vcmp.ge.f32.partialorder %v1717_v53, 0.0  ;;  %v1276_v57 = vmul.f32 0.2, %v1717_v53  ;;  %v1718_v58 = vadd.f32 %v1268_v55, %v726_v2  ;;  %v1716_v59 = vpop.f32.mrb[3].mxu0 }
 0x151   : >> { %v1278_v60 = vsel %vm1274_vm4, %v1717_v53, %v1276_v57  ;;  %vm1275_vm6 = vcmp.ge.f32.partialorder %v1718_v58, 0.0  ;;  %v1277_v61 = vmul.f32 0.2, %v1718_v58 }
 0x152   : >> { %1283 = vst.msk [vmem:[%s1281_s4] sm:$0xff] %vm1282_vm5, %v1278_v60 }
 0x153   : >> { %v1279_v62 = vsel %vm1275_vm6, %v1718_v58, %v1277_v61 }
 0x154   : >> { %1284 = vst.msk [vmem:[%s1281_s4 + $0x8] sm:$0xff] %vm1282_vm5, %v1279_v62 }
 0x155   : > { %1896 = shalt.err (!%p1893_p7)
}
 0x156   : > { %s1897_s28 = scalar_lea.hbm %s2276_s8, 2048  ;;  %s1901_s4 = scalar_lea.hbm %s2334_s2, 8192 }
 0x157   : > { %p1898_p9 = scmp.ne.s32.totalorder %s2276_s8, %s1897_s28  ;;  %p1902_p12 = scmp.lt.u32.totalorder %s2276_s8, %s2334_s2 }
 0x158   : > { %p1903_p13 = scmp.lt.u32.totalorder %s1901_s4, %s1897_s28  ;;  %p1905_p1 = scmp.lt.u32.totalorder %s1897_s28, %s2276_s8 }
 0x159   : > { %p1899_p10 = pnand %p1898_p9, %p2058_p3 }
 0x15a   : > { %p1904_p0 = por %p1903_p13, %p1902_p12 }
 0x15b   : > { %p1900_p11 = pneg %p1899_p10 }
 0x15c   : > { %p1906_p2 = por %p1905_p1, %p1904_p0 }
 0x15e   : > { %p1907_p4 = pnand %p1906_p2, %p1900_p11 }
 0x160   : > { %1910 = shalt.err (!%p1907_p4)
}
 0x161   : > { %s1990_s24 = smov 128   ;;  %s1991_s25 = smov 8  }
 0x162   : > { %1776 = dma.vmem_to_hbm [thread:$0]  (%p2058_p3), %s2271_s21, 2048, %s2276_s8, %s2280_s6, %s1990_s24, %s1990_s24, %s1991_s25  }
 0x163 PF: > { %p1782_p5 = scmp.ge.s32.totalorder %s1981_s16, 2  ;;  %s1318_s26 = sand.u32 1, %s1953_s9  }
 0x164   : > { %s1319_s30 = scalar_lea.sflag [#allocation3], %s1318_s26 }
 0x165   : > { %p1779_p6 = pnand %p1782_p5, %p2067_p8 }
 0x167   : > { %1948 = dma.done.wait (!%p1779_p6), %s1319_s30, 2048  }
 0x168   : > { %1950 = vsyncadd (!%p1779_p6), %s1319_s30, 4294965248  ;;  %s15_s16 = sadd.s32 1, %s1981_s16   ;;  %s2337_s9 = smov %s1957_s10 }
 0x169   : > { %p12_p7 = scmp.ge.s32.totalorder %s15_s16, 6   ;;  %s2338_s10 = smov %s1961_s11 }
 0x16a   : > { %s2339_s11 = smov %s2076_s27  ;;  %s2340_s12 = smov %s1973_s14 }
 0x16b   : > { %s2341_s13 = smov %s1977_s15  ;;  %s2342_s14 = smov %s2345_s19 }
 0x16c   : > { %s2343_s15 = smov %s2349_s20  ;;  %14 = sbr.rel (!%p12_p7) target bundleno = 5 (0x5), region = 108 }
 0x173   :  { %1324 = vsyncpa [#allocation3], 1 }
 0x174   :  { %1326 = vsyncpa [#allocation3 + $0x1], 1 }

</bundles_post_ra>
